<compile_context>
chip_gen: v7x
topology: tpu7x:2x2x1
jax: 0.10.0
libtpu: 0.0.40
codegen_flags: <defaults>
</compile_context>

<pallas_src>
import math

import jax
import jax.numpy as jnp
from jax import lax
from jax.experimental import pallas as pl
from jax.experimental.pallas import tpu as pltpu


def _sublane_pack(itemsize):
    # dtype-aware sublane packing: 8 (4-byte), 16 (2-byte), 32 (1-byte)
    return {4: 8, 2: 16, 1: 32}.get(itemsize, 8)


def _pick_b_tile(Bg, Gc, row_target=256):
    """Batch block size.

    The 2-D output block is (b_tile, g*K), so its row dim must be a multiple
    of 8 or the full batch extent.  Prefer >=2 blocks on the (parallel) batch
    axis so both v7x TensorCores get work, and ~row_target accumulator rows so
    the ~0.35us per-grid-step overhead is amortized.
    """
    want = max(8, (row_target // max(1, Gc)) // 8 * 8)
    best = None
    for d in range(8, Bg // 2 + 1, 8):
        if Bg % d == 0 and d <= want:
            best = d
    return best if best is not None else Bg


def _pick_hw_tile(HW, rows, itemsize, target_bytes=2 << 20, max_bytes=8 << 20,
                  max_chunks=32, min_lanes=512):
    """Spatial (lane) tile: multiple of 128, ~1-4 MiB per pipeline buffer,
    bounded unroll (<= max_chunks 128-lane chunks), >= min_lanes if possible,
    hard-capped so the double-buffered tile always fits the scoped VMEM."""
    full128 = (HW // 128) * 128                     # caller guarantees HW >= 128
    cap_target = (target_bytes // max(1, rows * itemsize)) // 128 * 128
    cap_hard = (max_bytes // max(1, rows * itemsize)) // 128 * 128
    tile = min(full128, max_chunks * 128, max(cap_target, min_lanes))
    tile = min(tile, max(cap_hard, 128))
    return max(tile, 128)


def _make_kernel(hw_tile, hw_valid, Gc, inv_hw, use_mxu, needs_mask, n_part):
    n_chunks = hw_tile // 128
    assert hw_tile % 128 == 0 and n_chunks >= 1

    def kernel(x_ref, w_ref, b_ref, o_ref, acc_ref):
        # x_ref: (b_tile, Gc, hw_tile)   w_ref: (Gc, gK)   b_ref: (1, gK)
        # o_ref: (b_tile, gK)            acc_ref: (b_tile, Gc, 128) f32
        k = pl.program_id(1)
        nk = pl.num_programs(1)

        @pl.when(k == 0)
        def _init():
            acc_ref[...] = jnp.zeros_like(acc_ref)

        def accumulate(masked):
            # Lane-preserving partial sums: plain VPU adds per 128-lane chunk,
            # no per-step cross-lane (XLU) reduce or relayout.  A few
            # independent partial accumulators break the serial add chain when
            # the accumulator is only a couple of vregs.
            parts = [jnp.zeros(acc_ref.shape, jnp.float32) for _ in range(n_part)]
            for c in range(n_chunks):
                chunk = x_ref[:, :, c * 128:(c + 1) * 128].astype(jnp.float32)
                if masked:
                    pos = (k * hw_tile + c * 128 +
                           lax.broadcasted_iota(jnp.int32, chunk.shape, 2))
                    chunk = jnp.where(pos < hw_valid, chunk, 0.0)
                parts[c % n_part] = parts[c % n_part] + chunk
            total = parts[0]
            for p in parts[1:]:
                total = total + p
            acc_ref[...] += total

        if needs_mask:
            @pl.when(k < nk - 1)
            def _body():
                accumulate(False)

            @pl.when(k == nk - 1)
            def _tail():
                accumulate(True)
        else:
            accumulate(False)

        @pl.when(k == nk - 1)
        def _finalize():
            # Single cross-lane reduce + tiny 1x1-conv contraction per block.
            pooled = jnp.sum(acc_ref[...], axis=-1) * jnp.float32(inv_hw)  # (b_tile, Gc)
            w = w_ref[...]                                                 # (Gc, gK) f32
            if use_mxu:
                logits = jnp.dot(pooled, w, preferred_element_type=jnp.float32)
            else:
                # Small channel count: keep the contraction on the VPU.
                logits = jnp.zeros(o_ref.shape, jnp.float32)
                for c in range(Gc):
                    logits = logits + pooled[:, c:c + 1] * w[c:c + 1, :]
            logits = logits + b_ref[...]
            o_ref[...] = jax.nn.sigmoid(logits).astype(o_ref.dtype)

    return kernel


def attention_forward(x_nchw, weight, bias, hw_tile=None):
    """AdaptiveAvgPool2d(1) -> Conv2d(Cin, K, 1) -> view -> sigmoid, fused.

    x_nchw: (B, Cin, H, W); weight: (K, Cin, 1, 1); bias: (K,).  Returns (B, K).
    """
    B, Cin, H, W = x_nchw.shape
    K = weight.shape[0]
    HW = H * W
    itemsize = x_nchw.dtype.itemsize
    pack = _sublane_pack(itemsize)

    # ---- Layout: fold batch groups into the channel axis so the sublane dim
    # is a multiple of the dtype pack (no 2-4x sublane padding for small Cin).
    # (B, Cin, H, W) -> (B//g, g*Cin, HW) is a free, contiguous reshape.
    g = pack // math.gcd(pack, Cin)
    if g > 1 and B % g != 0:
        g = 1  # fallback: full-extent channel block (accepts sublane padding)
    Bg, Gc, gK = B // g, g * Cin, g * K

    x3 = x_nchw.reshape(Bg, Gc, HW)
    HW_work = HW
    if HW < 128:
        # Too small for one 128-lane chunk: zero-pad once (zeros don't change
        # the sum; the mean still divides by the true HW).
        x3 = jnp.pad(x3, ((0, 0), (0, 0), (0, 128 - HW)))
        HW_work = 128

    # 1x1-conv parameters, expanded block-diagonally to the grouped channel
    # axis: (Gc, gK) = kron(I_g, W^T).  f32, tiny, VMEM-resident.
    w_ck = jnp.transpose(weight.reshape(K, Cin), (1, 0)).astype(jnp.float32)
    if g > 1:
        w_mat = jnp.kron(jnp.eye(g, dtype=jnp.float32), w_ck)      # (Gc, gK)
        b_mat = jnp.tile(bias.astype(jnp.float32), g).reshape(1, gK)
    else:
        w_mat = w_ck
        b_mat = bias.astype(jnp.float32).reshape(1, gK)

    # ---- Tiling.
    b_tile = _pick_b_tile(Bg, Gc)
    if hw_tile is None:
        hw_tile = _pick_hw_tile(HW_work, b_tile * Gc, itemsize)
    assert hw_tile % 128 == 0 and hw_tile <= HW_work
    n_hw = pl.cdiv(HW_work, hw_tile)
    needs_mask = (HW_work % hw_tile) != 0
    grid = (Bg // b_tile, n_hw)

    n_part = 4 if (b_tile * Gc <= 32 and hw_tile // 128 >= 8) else 1
    use_mxu = Gc > 16
    kernel = _make_kernel(hw_tile, HW, Gc, 1.0 / HW, use_mxu, needs_mask, n_part)

    # Tiles are capped at a few MiB, so a modest scoped VMEM limit suffices on
    # every generation (64 MiB physical on v7x, 128 MiB on v5e/v6e).
    try:
        vmem_cap = pltpu.get_tpu_info().vmem_capacity_bytes
    except Exception:
        vmem_cap = 64 * 1024 * 1024
    vmem_limit = int(min(vmem_cap // 2, 64 * 1024 * 1024))

    def x_index(i, k):
        return (i, 0, k)

    # Deeper input pipelining hides per-step DMA issue gaps once the tile is
    # small and the reduction has enough steps (mainly helps v7x @ 3.2 TB/s).
    x_spec = None
    if n_hw >= 4:
        try:
            x_spec = pl.BlockSpec((b_tile, Gc, hw_tile), x_index,
                                  pipeline_mode=pl.Buffered(3))
        except Exception:
            x_spec = None
    if x_spec is None:
        x_spec = pl.BlockSpec((b_tile, Gc, hw_tile), x_index)

    out = pl.pallas_call(
        kernel,
        out_shape=jax.ShapeDtypeStruct((Bg, gK), x_nchw.dtype),
        grid_spec=pltpu.PrefetchScalarGridSpec(
            num_scalar_prefetch=0,
            grid=grid,
            in_specs=[
                x_spec,
                # Constant block index -> weight / bias stay VMEM-resident.
                pl.BlockSpec((Gc, gK), lambda i, k: (0, 0)),
                pl.BlockSpec((1, gK), lambda i, k: (0, 0)),
            ],
            out_specs=pl.BlockSpec((b_tile, gK), lambda i, k: (i, 0)),
            scratch_shapes=[pltpu.VMEM((b_tile, Gc, 128), jnp.float32)],
        ),
        compiler_params=pltpu.CompilerParams(
            # Batch axis shards across TensorCores; HW is the reduction.
            dimension_semantics=("parallel", "arbitrary"),
            vmem_limit_bytes=vmem_limit,
        ),
    )(x3, w_mat, b_mat)

    # (Bg, g*K) -> (B, K): free contiguous reshape undoing the batch grouping.
    return out.reshape(B, K)


def _reference(x, weight, bias):
    K, Cin = weight.shape[0], weight.shape[1]
    pooled = jnp.mean(x.astype(jnp.float32), axis=(2, 3))               # (B, Cin)
    logits = pooled @ weight.reshape(K, Cin).T.astype(jnp.float32)
    logits = logits + bias.astype(jnp.float32)
    return jax.nn.sigmoid(logits)


if __name__ == "__main__":
    root = jax.random.PRNGKey(0)

    def run_case(seed_key, B, Cin, H, W, K, hw_tile=None):
        kx, kw, kb = jax.random.split(seed_key, 3)
        x = jax.random.normal(kx, (B, Cin, H, W), dtype=jnp.float32)
        weight = jax.random.normal(kw, (K, Cin, 1, 1), dtype=jnp.float32) * 0.1
        bias = jax.random.normal(kb, (K,), dtype=jnp.float32) * 0.1
        out = jax.block_until_ready(
            attention_forward(x, weight, bias, hw_tile=hw_tile))
        ref = _reference(x, weight, bias)
        assert out.shape == (B, K), (out.shape, (B, K))
        assert jnp.allclose(out, ref, atol=1e-5, rtol=1e-5), (
            f"max abs err {jnp.max(jnp.abs(out - ref))}")

    keys = jax.random.split(root, 3)
    # Primary case from the module (B=2, Cin=4, 16x16, K=8); hw_tile=128 forces
    # the multi-step reduction (init / accumulate / finalize) path.
    run_case(keys[0], 2, 4, 16, 16, 8, hw_tile=128)
    # HW not a multiple of 128 -> masked tail-block path.
    run_case(keys[1], 2, 4, 15, 15, 8)
    # Larger channels/batch: ungrouped layout, MXU finalize, several parallel
    # batch blocks, HW < 128 zero-pad path.
    run_case(keys[2], 32, 32, 9, 9, 16)

    print("KERNEL_OK")
</pallas_src>

<mosaic_0001>
module attributes {stable_mosaic.version = 11 : i64} {
  func.func @kernel(%arg0: i32, %arg1: i32, %arg2: memref<1x8x128xf32, #tpu.memory_space<vmem>>, %arg3: memref<8x16xf32, #tpu.memory_space<vmem>>, %arg4: memref<1x16xf32, #tpu.memory_space<vmem>>, %arg5: memref<1x16xf32, #tpu.memory_space<vmem>>, %arg6: memref<1x8x128xf32, #tpu.memory_space<vmem>>) attributes {dimension_semantics = [#tpu.dimension_semantics<parallel>, #tpu.dimension_semantics<arbitrary>], iteration_bounds = array<i64: 1, 2>, scalar_prefetch = 0 : i64, scratch_operands = 1 : i64, tpu.core_type = #tpu.core_type<tc>, window_params = [{transform_indices = @transform_0, window_bounds = array<i64: 1, 8, 128>}, {pipeline_mode = #tpu.pipeline_mode<synchronous>, transform_indices = @transform_1, window_bounds = array<i64: 8, 16>}, {pipeline_mode = #tpu.pipeline_mode<synchronous>, transform_indices = @transform_2, window_bounds = array<i64: 1, 16>}, {transform_indices = @transform_3, window_bounds = array<i64: 1, 16>}]} {
    %c0_i32 = arith.constant 0 : i32
    %0 = arith.cmpi eq, %arg1, %c0_i32 : i32
    %1 = arith.extui %0 : i1 to i32
    %c0_i32_0 = arith.constant 0 : i32
    %2 = arith.cmpi ne, %1, %c0_i32_0 : i32
    scf.if %2 {
      %cst_10 = arith.constant 0.000000e+00 : f32
      %12 = vector.broadcast %cst_10 : f32 to vector<1x8x128xf32>
      %c0_11 = arith.constant 0 : index
      %c0_12 = arith.constant 0 : index
      %c0_13 = arith.constant 0 : index
      %13 = vector.load %arg6[%c0_11, %c0_12, %c0_13] : memref<1x8x128xf32, #tpu.memory_space<vmem>>, vector<1x8x128xf32>
      tpu.vector_store %arg6[%c0_11, %c0_12, %c0_13], %12 {strides = array<i32>} : memref<1x8x128xf32, #tpu.memory_space<vmem>>, vector<1x8x128xf32>,
    } else {
    }
    %cst = arith.constant 0.000000e+00 : f32
    %3 = vector.broadcast %cst : f32 to vector<1x8x128xf32>
    %c0 = arith.constant 0 : index
    %c0_1 = arith.constant 0 : index
    %c0_2 = arith.constant 0 : index
    %4 = vector.load %arg2[%c0, %c0_1, %c0_2] : memref<1x8x128xf32, #tpu.memory_space<vmem>>, vector<1x8x128xf32>
    %5 = arith.addf %3, %4 : vector<1x8x128xf32>
    %c0_3 = arith.constant 0 : index
    %c0_4 = arith.constant 0 : index
    %c0_5 = arith.constant 0 : index
    %6 = vector.load %arg6[%c0_3, %c0_4, %c0_5] : memref<1x8x128xf32, #tpu.memory_space<vmem>>, vector<1x8x128xf32>
    %7 = arith.addf %6, %5 : vector<1x8x128xf32>
    %c0_6 = arith.constant 0 : index
    %c0_7 = arith.constant 0 : index
    %c0_8 = arith.constant 0 : index
    %8 = vector.load %arg6[%c0_6, %c0_7, %c0_8] : memref<1x8x128xf32, #tpu.memory_space<vmem>>, vector<1x8x128xf32>
    tpu.vector_store %arg6[%c0_6, %c0_7, %c0_8], %7 {strides = array<i32>} : memref<1x8x128xf32, #tpu.memory_space<vmem>>, vector<1x8x128xf32>,
    %c1_i32 = arith.constant 1 : i32
    %9 = arith.cmpi eq, %arg1, %c1_i32 : i32
    %10 = arith.extui %9 : i1 to i32
    %c0_i32_9 = arith.constant 0 : i32
    %11 = arith.cmpi ne, %10, %c0_i32_9 : i32
    scf.if %11 {
      %c0_10 = arith.constant 0 : index
      %c0_11 = arith.constant 0 : index
      %c0_12 = arith.constant 0 : index
      %12 = vector.load %arg6[%c0_10, %c0_11, %c0_12] : memref<1x8x128xf32, #tpu.memory_space<vmem>>, vector<1x8x128xf32>
      %cst_13 = arith.constant dense<0.000000e+00> : vector<1x8xf32>
      %13 = vector.multi_reduction <add>, %12, %cst_13 [2] : vector<1x8x128xf32> to vector<1x8xf32>
      %cst_14 = arith.constant 3.906250e-03 : f32
      %14 = vector.broadcast %cst_14 : f32 to vector<1x8xf32>
      %15 = arith.mulf %13, %14 : vector<1x8xf32>
      %c0_15 = arith.constant 0 : index
      %c0_16 = arith.constant 0 : index
      %16 = vector.load %arg3[%c0_15, %c0_16] : memref<8x16xf32, #tpu.memory_space<vmem>>, vector<8x16xf32>
      %cst_17 = arith.constant 0.000000e+00 : f32
      %17 = vector.broadcast %cst_17 : f32 to vector<1x16xf32>
      %18 = vector.extract_strided_slice %15 {offsets = [0, 0], sizes = [1, 1], strides = [1, 1]} : vector<1x8xf32> to vector<1x1xf32>
      %19 = vector.extract_strided_slice %16 {offsets = [0, 0], sizes = [1, 16], strides = [1, 1]} : vector<8x16xf32> to vector<1x16xf32>
      %20 = vector.broadcast %18 : vector<1x1xf32> to vector<1x16xf32>
      %21 = arith.mulf %20, %19 : vector<1x16xf32>
      %22 = arith.addf %17, %21 : vector<1x16xf32>
      %23 = vector.extract_strided_slice %15 {offsets = [0, 1], sizes = [1, 1], strides = [1, 1]} : vector<1x8xf32> to vector<1x1xf32>
      %24 = vector.extract_strided_slice %16 {offsets = [1, 0], sizes = [1, 16], strides = [1, 1]} : vector<8x16xf32> to vector<1x16xf32>
      %25 = vector.broadcast %23 : vector<1x1xf32> to vector<1x16xf32>
      %26 = arith.mulf %25, %24 : vector<1x16xf32>
      %27 = arith.addf %22, %26 : vector<1x16xf32>
      %28 = vector.extract_strided_slice %15 {offsets = [0, 2], sizes = [1, 1], strides = [1, 1]} : vector<1x8xf32> to vector<1x1xf32>
      %29 = vector.extract_strided_slice %16 {offsets = [2, 0], sizes = [1, 16], strides = [1, 1]} : vector<8x16xf32> to vector<1x16xf32>
      %30 = vector.broadcast %28 : vector<1x1xf32> to vector<1x16xf32>
      %31 = arith.mulf %30, %29 : vector<1x16xf32>
      %32 = arith.addf %27, %31 : vector<1x16xf32>
      %33 = vector.extract_strided_slice %15 {offsets = [0, 3], sizes = [1, 1], strides = [1, 1]} : vector<1x8xf32> to vector<1x1xf32>
      %34 = vector.extract_strided_slice %16 {offsets = [3, 0], sizes = [1, 16], strides = [1, 1]} : vector<8x16xf32> to vector<1x16xf32>
      %35 = vector.broadcast %33 : vector<1x1xf32> to vector<1x16xf32>
      %36 = arith.mulf %35, %34 : vector<1x16xf32>
      %37 = arith.addf %32, %36 : vector<1x16xf32>
      %38 = vector.extract_strided_slice %15 {offsets = [0, 4], sizes = [1, 1], strides = [1, 1]} : vector<1x8xf32> to vector<1x1xf32>
      %39 = vector.extract_strided_slice %16 {offsets = [4, 0], sizes = [1, 16], strides = [1, 1]} : vector<8x16xf32> to vector<1x16xf32>
      %40 = vector.broadcast %38 : vector<1x1xf32> to vector<1x16xf32>
      %41 = arith.mulf %40, %39 : vector<1x16xf32>
      %42 = arith.addf %37, %41 : vector<1x16xf32>
      %43 = vector.extract_strided_slice %15 {offsets = [0, 5], sizes = [1, 1], strides = [1, 1]} : vector<1x8xf32> to vector<1x1xf32>
      %44 = vector.extract_strided_slice %16 {offsets = [5, 0], sizes = [1, 16], strides = [1, 1]} : vector<8x16xf32> to vector<1x16xf32>
      %45 = vector.broadcast %43 : vector<1x1xf32> to vector<1x16xf32>
      %46 = arith.mulf %45, %44 : vector<1x16xf32>
      %47 = arith.addf %42, %46 : vector<1x16xf32>
      %48 = vector.extract_strided_slice %15 {offsets = [0, 6], sizes = [1, 1], strides = [1, 1]} : vector<1x8xf32> to vector<1x1xf32>
      %49 = vector.extract_strided_slice %16 {offsets = [6, 0], sizes = [1, 16], strides = [1, 1]} : vector<8x16xf32> to vector<1x16xf32>
      %50 = vector.broadcast %48 : vector<1x1xf32> to vector<1x16xf32>
      %51 = arith.mulf %50, %49 : vector<1x16xf32>
      %52 = arith.addf %47, %51 : vector<1x16xf32>
      %53 = vector.extract_strided_slice %15 {offsets = [0, 7], sizes = [1, 1], strides = [1, 1]} : vector<1x8xf32> to vector<1x1xf32>
      %54 = vector.extract_strided_slice %16 {offsets = [7, 0], sizes = [1, 16], strides = [1, 1]} : vector<8x16xf32> to vector<1x16xf32>
      %55 = vector.broadcast %53 : vector<1x1xf32> to vector<1x16xf32>
      %56 = arith.mulf %55, %54 : vector<1x16xf32>
      %57 = arith.addf %52, %56 : vector<1x16xf32>
      %c0_18 = arith.constant 0 : index
      %c0_19 = arith.constant 0 : index
      %58 = vector.load %arg4[%c0_18, %c0_19] : memref<1x16xf32, #tpu.memory_space<vmem>>, vector<1x16xf32>
      %59 = arith.addf %57, %58 : vector<1x16xf32>
      %60 = arith.negf %59 : vector<1x16xf32>
      %61 = math.exp %60 : vector<1x16xf32>
      %cst_20 = arith.constant 1.000000e+00 : f32
      %62 = vector.broadcast %cst_20 : f32 to vector<1x16xf32>
      %63 = arith.addf %62, %61 : vector<1x16xf32>
      %64 = arith.divf %62, %63 : vector<1x16xf32>
      %c0_21 = arith.constant 0 : index
      %c0_22 = arith.constant 0 : index
      %65 = vector.load %arg5[%c0_21, %c0_22] : memref<1x16xf32, #tpu.memory_space<vmem>>, vector<1x16xf32>
      tpu.vector_store %arg5[%c0_21, %c0_22], %64 {strides = array<i32>} : memref<1x16xf32, #tpu.memory_space<vmem>>, vector<1x16xf32>,
    } else {
    }
    return
  }
  func.func @transform_0(%arg0: i32, %arg1: i32) -> (i32, i32, i32) {
    %c0_i32 = arith.constant 0 : i32
    %c0_i32_0 = arith.constant 0 : i32
    return %arg0, %c0_i32, %arg1 : i32, i32, i32
  }
  func.func @transform_1(%arg0: i32, %arg1: i32) -> (i32, i32) {
    %c0_i32 = arith.constant 0 : i32
    %c0_i32_0 = arith.constant 0 : i32
    %c0_i32_1 = arith.constant 0 : i32
    return %c0_i32, %c0_i32_0 : i32, i32
  }
  func.func @transform_2(%arg0: i32, %arg1: i32) -> (i32, i32) {
    %c0_i32 = arith.constant 0 : i32
    %c0_i32_0 = arith.constant 0 : i32
    %c0_i32_1 = arith.constant 0 : i32
    return %c0_i32, %c0_i32_0 : i32, i32
  }
  func.func @transform_3(%arg0: i32, %arg1: i32) -> (i32, i32) {
    %c0_i32 = arith.constant 0 : i32
    %c0_i32_0 = arith.constant 0 : i32
    return %arg0, %c0_i32 : i32, i32
  }
}

</mosaic_0001>

<bundles_post_ra>
// kernel: tpu_custom_call.1
= control target key start
LH: loop header
LB: loop body
LE: loop exit
PB: predicated region body
PF: predicated region fallthrough
CT: control target
= control target key end

     0   :  { %8 = vsyncpa [#allocation4], 0  ;;  %s798_s0 = inlined_call_operand.hbm [shape: f32[1,8,256], index: 0, kind: input, shape index: {}]   ;;  %s799_s1 = inlined_call_operand.hbm [shape: f32[8,16], index: 1, kind: input, shape index: {}]   ;;  %s800_s2 = inlined_call_operand.vmem [shape: f32[1,16], index: 2, kind: input, shape index: {}]   ;;  %s801_s3 = inlined_call_operand.hbm [shape: f32[1,16], index: 3, kind: output, shape index: {}]  }
   0x1   :  { %10 = vsyncpa [#allocation4 + $0x1], 0 }
   0x2   :  { %11 = vsyncpa [#allocation7], 0 }
   0x3   :  { %12 = vsyncpa [#allocation5], 0  ;;  %s605_s12 = smov 0   ;;  %s607_s13 = smov 0  }
   0x4   :  { %s609_s14 = smov 0   ;;  %s611_s15 = smov 0  }
   0x5   :  { %s613_s16 = smov 0   ;;  %s615_s17 = smov 0  }
   0x6 LB: > { %s343_s18 = sadd.s32 4294967295, %s579_s17   ;;  %p52_p0 = scmp.ne.s32.totalorder %s563_s13, %s559_s12  ;;  %s579_s17 = sphi %s615_s17, %s18_s17   ;;  %s575_s16 = sphi %s613_s16, %s821_s16   ;;  %s571_s15 = sphi %s611_s15, %s820_s15   ;;  %s567_s14 = sphi %s609_s14, %s819_s14   ;;  %s563_s13 = sphi %s607_s13, %s818_s13   ;;  %s559_s12 = sphi %s605_s12, %s817_s12  }
   0x7   : > { %p637_p1 = scmp.eq.s32.totalorder %s343_s18, 0  ;;  %p344_p2 = scmp.ge.s32.totalorder %s579_s17, 1 }
   0x8   : > { %p131_p3 = scmp.lt.s32.totalorder %s579_s17, 3  ;;  %s581_s22 = smov [#allocation6]  }
   0x9   : > { %s806_s19 = scalar_select %p637_p1, 1, 0 }
   0xa   : > { %p645_p4 = por %p637_p1, %p52_p0  ;;  %p649_p5 = pnand %p344_p2, %p131_p3 }
   0xb   : > { %s144_s23 = sshll.u32 %s581_s22, 4  ;;  %s27_s25 = sadd.s32 1, %s575_s16  ;;  %s145_s23 = int_to_ptr.vmem [resolvable:$true] %s144_s23 }
   0xc   : > { %s807_s20 = scalar_select %p645_p4, 1, 0 }
   0xd   : > { %s808_s21 = scalar_select %p649_p5, 1, 0 }
   0xe   : > { %p369_p6 = pneg %p649_p5  ;;  %s39_s26 = sadd.s32 1, %s567_s14 }
   0xf   : > { %p663_p8 = scmp.ge.s32.totalorder %s27_s25, 2  ;;  %s437_s30 = scalar_lea.hbm %s799_s1, 128 }
  0x10   : > { %p657_p7 = pnand %p369_p6, %p637_p1  ;;  %p438_p9 = scmp.ne.s32.totalorder %s799_s1, %s437_s30 }
  0x11   : > { %s810_s27 = scalar_select %p663_p8, 1, 0 }
  0x12   : > { %p439_p10 = pneg %p657_p7  ;;  %p444_p13 = scmp.lt.u32.totalorder %s437_s30, %s799_s1 }
  0x14   : > { %p440_p11 = pnand %p439_p10, %p438_p9 }
  0x16   : > { %p441_p12 = pneg %p440_p11 }
  0x18   : > { %p446_p0 = pnand %p444_p13, %p441_p12 }
  0x1a   : > { %449 = shalt.err (!%p446_p0)
}
  0x1b   : > { %s450_s8 = scalar_lea.vmem %s145_s23, 128  ;;  %p458_p1 = scmp.lt.s32.totalorder %s145_s23, %s145_s23 }
  0x1c   : > { %p451_p2 = scmp.ne.s32.totalorder %s145_s23, %s450_s8  ;;  %p459_p4 = scmp.lt.s32.totalorder %s450_s8, %s450_s8 }
  0x1e   : > { %p453_p3 = pnand %p451_p2, %p439_p10  ;;  %p460_p5 = por %p459_p4, %p458_p1 }
  0x20   : > { %p454_p6 = pneg %p453_p3 }
  0x22   : > { %p461_p8 = pnand %p460_p5, %p454_p6 }
  0x24   : > { %464 = shalt.err (!%p461_p8)
}
  0x25   : > { %372 = dma.hbm_to_vmem [thread:$0]  (!%p657_p7), %s799_s1, 128, %s145_s23, [#allocation7]  }
  0x26   : > { %p811_p9 = scmp.ne.s32.totalorder %s810_s27, 0  ;;  %p46_p1 = scmp.ne.s32.totalorder %s567_s14, %s563_s13 }
  0x27   : > { %p47_p4 = scmp.eq.s32.totalorder %s579_s17, 0  ;;  %p378_p5 = scmp.lt.s32.totalorder %s579_s17, 2 }
  0x28   : > { %s823_s25 = smov (%p811_p9, %s27_s25), 0  ;;  %s158_s12 = sand.u32 1, %s567_s14  }
  0x29   : > { %s35_s11 = ssub.s32 %s575_s16, %s823_s25  ;;  %p48_p10 = por %p47_p4, %p46_p1 }
  0x2a   : > { %p37_p8 = scmp.eq.s32.totalorder %s35_s11, 0  ;;  %s348_s22 = sshll.u32 %s575_s16, 7 }
  0x2b   : > { %s347_s28 = sshll.u32 %s158_s12, 3  ;;  %s703_s23 = scalar_lea.hbm %s798_s0, %s348_s22 }
  0x2c   : > { %s698_s24 = scalar_select %p37_p8, %s567_s14, %s39_s26  }
  0x2d   : > { %s162_s27 = scalar_lea.vmem [#allocation3], %s347_s28  ;;  %p705_p7 = pnand %p378_p5, %p48_p10 }
  0x2e   : > { %s171_s4 = sshll.u32 %s162_s27, 4  ;;  %s159_s26 = scalar_lea.sflag [#allocation4], %s158_s12  ;;  %s709_s4 = int_to_ptr.vmem [resolvable:$true] %s171_s4 }
  0x2f   : > { %s465_s6 = scalar_lea.hbm %s703_s23, 128  ;;  %p467_p12 = pneg %p705_p7 }
  0x30   : > { %p466_p11 = scmp.ne.s32.totalorder %s703_s23, %s465_s6  ;;  %s470_s9 = scalar_lea.hbm %s798_s0, 256 }
  0x31   : > { %p471_p2 = scmp.lt.u32.totalorder %s703_s23, %s798_s0  ;;  %p472_p3 = scmp.lt.u32.totalorder %s470_s9, %s465_s6 }
  0x32   : > { %p468_p13 = pnand %p467_p12, %p466_p11  ;;  %p474_p9 = scmp.lt.u32.totalorder %s465_s6, %s703_s23 }
  0x33   : > { %p473_p6 = por %p472_p3, %p471_p2 }
  0x34   : > { %p469_p0 = pneg %p468_p13 }
  0x35   : > { %p475_p1 = por %p474_p9, %p473_p6 }
  0x37   : > { %p476_p4 = pnand %p475_p1, %p469_p0 }
  0x39   : > { %479 = shalt.err (!%p476_p4)
}
  0x3a   : > { %s480_s12 = scalar_lea.vmem %s709_s4, 128  ;;  %s582_s22 = smov [#allocation3]  }
  0x3b   : > { %p481_p5 = scmp.ne.s32.totalorder %s709_s4, %s480_s12  ;;  %s485_s28 = sshll.u32 %s582_s22, 4  ;;  %s486_s28 = int_to_ptr.vmem [resolvable:$false] %s485_s28 }
  0x3c   : > { %s487_s29 = scalar_lea.vmem %s486_s28, 256  ;;  %p488_p11 = scmp.lt.s32.totalorder %s709_s4, %s486_s28 }
  0x3d   : > { %p483_p8 = pnand %p481_p5, %p467_p12  ;;  %p489_p13 = scmp.lt.s32.totalorder %s487_s29, %s480_s12 }
  0x3f   : > { %p484_p10 = pneg %p483_p8  ;;  %p490_p2 = por %p489_p13, %p488_p11 }
  0x41   : > { %p491_p3 = pnand %p490_p2, %p484_p10 }
  0x43   : > { %494 = shalt.err (!%p491_p3)
}
  0x44   : > { %376 = dma.hbm_to_vmem [thread:$0]  (!%p705_p7), %s703_s23, 128, %s709_s4, %s159_s26  }
  0x45   : > { %p813_p0 = scmp.ne.s32.totalorder %s808_s21, 0 }
  0x46   : > { %s182_s30 = sand.u32 (!%p813_p0), 1, %s563_s13   ;;  %p814_p12 = scmp.ne.s32.totalorder (!%p813_p0), %s807_s20, 0 }
  0x47   : > { %180 = sbr.rel (%p813_p0) target bundleno = 318 (0x13e), region = 32  ;;  %s350_s27 = sshll.u32 (!%p813_p0), %s182_s30, 3 }
  0x48   : > { %s183_s6 = scalar_lea.sflag (!%p813_p0), [#allocation4], %s182_s30  ;;  %s186_s7 = scalar_lea.vmem (!%p813_p0), [#allocation3], %s350_s27 }
  0x4e   : > { %546 = dma.done.wait (%p814_p12), %s183_s6, 128  }
  0x4f   : > { %548 = vsyncadd (%p814_p12), %s183_s6, 4294967168  ;;  %p815_p6 = scmp.ne.s32.totalorder %s806_s19, 0 }
  0x51   : > { %550 = dma.done.wait (%p815_p6), [#allocation7], 128  }
  0x52   : > { %552 = vsyncadd (%p815_p6), [#allocation7], 4294967168  ;;  %p352_p7 = scmp.ne.s32.totalorder %s571_s15, 0 }
  0x53   : > { %v583_v0 = vmov (!%p352_p7), 0.0  }
  0x54   : > { %211 = sbr.rel (%p352_p7) target bundleno = 91 (0x5b), region = 44  ;;  %212 = vst [vmem:[#allocation2] sm:$0xff] (!%p352_p7), %v583_v0 }
  0x5b PF: > { %v213_v1 = vld [vmem:[%s186_s7] sm:$0xff]  ;;  %v215_v2 = vld [vmem:[#allocation2] sm:$0xff]  ;;  %p353_p9 = scmp.ne.s32.totalorder %s571_s15, 1 }
  0x5c   : > { %v216_v3 = vadd.f32 %v215_v2, %v213_v1  ;;  %v226_v6 = vld [vmem:[#allocation6] sm:$0xff] (!%p353_p9)  ;;  %v251_v22 = vld [vmem:[%s800_s2] sm:$0x1] (!%p353_p9)  ;;  %vm259_vm0 = vcmask (!%p353_p9), 122880  }
  0x5d   : > { %221 = sbr.rel (%p353_p9) target bundleno = 293 (0x125), region = 48 }
  0x5e   : > { %217 = vst [vmem:[#allocation2] sm:$0xff] %v216_v3 }
  0x65   : > { %v222_v4 = vld [vmem:[#allocation2] sm:$0xff] }
  0x66   : > { %223 = vadd.xlane.f32.xlu0 %v222_v4 }
  0xf3   : > { %v224_v5 = vpop.xlane.xlu0 %223 }
  0xf4   : > { %v225_v7 = vmul.f32 0.00390625, %v224_v5 }
  0xf6   : > { %v227_v8 = vmul.f32 %v226_v6, %v225_v7 }
  0xf8   : > { %v230_v9 = vrot.slane %v227_v8, 1  ;;  %v233_v11 = vrot.slane %v227_v8, 2  ;;  %v236_v13 = vrot.slane %v227_v8, 3  ;;  %v239_v15 = vrot.slane %v227_v8, 4 }
  0xf9   : > { %v242_v17 = vrot.slane %v227_v8, 5  ;;  %v245_v19 = vrot.slane %v227_v8, 6  ;;  %v248_v21 = vrot.slane %v227_v8, 7 }
  0xfa   : > { %v232_v10 = vadd.f32 %v230_v9, %v227_v8 }
  0xfc   : > { %v235_v12 = vadd.f32 %v233_v11, %v232_v10 }
  0xfe   : > { %v238_v14 = vadd.f32 %v236_v13, %v235_v12 }
 0x100   : > { %v241_v16 = vadd.f32 %v239_v15, %v238_v14 }
 0x102   : > { %v244_v18 = vadd.f32 %v242_v17, %v241_v16 }
 0x104   : > { %v247_v20 = vadd.f32 %v245_v19, %v244_v18 }
 0x106   : > { %v250_v23 = vadd.f32 %v248_v21, %v247_v20 }
 0x108   : > { %v252_v24 = vadd.f32 %v251_v22, %v250_v23 }
 0x10a   : > { %v354_v25 = vmul.f32 -1.442695, %v252_v24 }
 0x10c   : > { %433 = vpow2.f32 %v354_v25 }
 0x116   : > { %v434_v26 = vpop.eup %433 }
 0x117   : > { %v256_v27 = vadd.f32 1.0, %v434_v26 }
 0x119   : > { %435 = vrcp.f32 %v256_v27 }
 0x123   : > { %v436_v28 = vpop.eup %435 }
 0x124   : > { %260 = vst.msk [vmem:[#allocation8] sm:$0x1] %vm259_vm0, %v436_v28 }
 0x125 PF: > { %p754_p1 = scmp.eq.s32.totalorder %s343_s18, 1  ;;  %s584_s21 = smov [#allocation8]  }
 0x126   : > { %s270_s23 = sshll.u32 %s584_s21, 4  ;;  %s271_s23 = int_to_ptr.vmem [resolvable:$true] %s270_s23 }
 0x127   : > { %s495_s4 = scalar_lea.vmem %s271_s23, 16  ;;  %s501_s5 = scalar_lea.vmem %s271_s23, 32 }
 0x128   : > { %p496_p4 = scmp.ne.s32.totalorder %s271_s23, %s495_s4  ;;  %p502_p10 = scmp.lt.s32.totalorder %s271_s23, %s271_s23 }
 0x129   : > { %p503_p11 = scmp.lt.s32.totalorder %s501_s5, %s495_s4 }
 0x12a   : > { %p497_p5 = pnand %p496_p4, %p754_p1 }
 0x12b   : > { %p504_p13 = por %p503_p11, %p502_p10 }
 0x12c   : > { %p498_p8 = pneg %p497_p5 }
 0x12e   : > { %p505_p2 = pnand %p504_p13, %p498_p8 }
 0x130   : > { %508 = shalt.err (!%p505_p2)
}
 0x131   : > { %s509_s8 = scalar_lea.hbm %s801_s3, 16 }
 0x132   : > { %p510_p3 = scmp.ne.s32.totalorder %s801_s3, %s509_s8  ;;  %p515_p6 = scmp.lt.u32.totalorder %s509_s8, %s801_s3 }
 0x134   : > { %p511_p0 = pnand %p510_p3, %p754_p1 }
 0x136   : > { %p512_p12 = pneg %p511_p0 }
 0x138   : > { %p517_p7 = pnand %p515_p6, %p512_p12 }
 0x13a   : > { %520 = shalt.err (!%p517_p7)
}
 0x13b   : > { %366 = dma.vmem_to_hbm [thread:$0]  (%p754_p1), %s271_s23, 16, %s801_s3, [#allocation5]  }
 0x13c   : > { %554 = dma.done.wait (%p754_p1), [#allocation5], 16  }
 0x13d   : > { %556 = vsyncadd (%p754_p1), [#allocation5], 4294967280 }
 0x13e PF: > { %s18_s17 = sadd.s32 1, %s579_s17   ;;  %s817_s12 = smov %s563_s13 }
 0x13f   : > { %p15_p9 = scmp.ge.s32.totalorder %s18_s17, 4   ;;  %s818_s13 = smov %s567_s14 }
 0x140   : > { %s819_s14 = smov %s698_s24  ;;  %s820_s15 = smov %s575_s16 }
 0x141   : > { %s821_s16 = smov %s823_s25  ;;  %17 = sbr.rel (!%p15_p9) target bundleno = 6 (0x6), region = 82 }
 0x148   :  { %283 = vsyncpa [#allocation4], 1 }
 0x149   :  { %285 = vsyncpa [#allocation4 + $0x1], 1 }
 0x14a   :  { %286 = vsyncpa [#allocation7], 1 }
 0x14b   :  { %287 = vsyncpa [#allocation5], 1 }
 0x14c   :  { %289 = vsyncpa [#allocation5 + $0x1], 1 }

</bundles_post_ra>
